<compile_context>
chip_gen: v7x
topology: tpu7x:2x2x1
jax: 0.10.0
libtpu: 0.0.40
codegen_flags: <defaults>
</compile_context>

<pallas_src>
import jax
import jax.numpy as jnp
from jax import lax
from jax.experimental import pallas as pl
from jax.experimental.pallas import tpu as pltpu

IN_SIZE = 3 * 64 * 64      # 12288
OUT_SIZE = 6

# Largest batch we keep fully VMEM-resident in one step:
#   512 * 12288 * 4 B = 24 MiB for x (double-buffered once, single step),
#   well under the default scoped-VMEM limit on v5e/v6e/v7x.
MAX_RESIDENT_ROWS = 512
# Batch tile for the large-batch path: 128 * 12288 * 4 B = 6 MiB per buffer.
TM = 128


def linear_kernel(x_ref, w_ref, b_ref, o_ref):
    # x_ref: (TM_or_B, K)   w_ref: (OUT, K)   b_ref: (1, OUT)   o_ref: (TM_or_B, OUT)
    y = lax.dot_general(
        x_ref[...], w_ref[...],
        dimension_numbers=(((1,), (1,)), ((), ())),   # contract K with K (x @ w.T)
        preferred_element_type=jnp.float32,
    )
    o_ref[...] = (y + b_ref[...]).astype(o_ref.dtype)


def linear_classifier(x, weight, bias):
    """x: (B, 3, 64, 64) f32; weight: (6, 12288) f32; bias: (6,) f32 -> (B, 6)."""
    B = x.shape[0]
    x_flat = x.reshape(B, IN_SIZE)       # row-major flatten == torch .view(m, -1)
    b_2d = bias.reshape(1, OUT_SIZE)

    if B <= MAX_RESIDENT_ROWS:
        # Single-step, fully resident path (optimal at small B).
        grid = (1,)
        tm = B
        semantics = ("arbitrary",)
    else:
        # Batch-tiled path: weight/bias stay resident, batch axis is parallel
        # so both TensorCores on megacore parts get work.
        grid = (pl.cdiv(B, TM),)
        tm = TM
        semantics = ("parallel",)

    return pl.pallas_call(
        linear_kernel,
        out_shape=jax.ShapeDtypeStruct((B, OUT_SIZE), jnp.float32),
        grid=grid,
        in_specs=[
            pl.BlockSpec((tm, IN_SIZE), lambda i: (i, 0)),         # x rows for this step
            pl.BlockSpec((OUT_SIZE, IN_SIZE), lambda i: (0, 0)),   # native (6, 12288), resident
            pl.BlockSpec((1, OUT_SIZE), lambda i: (0, 0)),         # bias, resident
        ],
        out_specs=pl.BlockSpec((tm, OUT_SIZE), lambda i: (i, 0)),
        compiler_params=pltpu.CompilerParams(
            dimension_semantics=semantics,
            vmem_limit_bytes=64 << 20,
        ),
    )(x_flat, weight, b_2d)


def init_params(key):
    """Deterministic params mirroring torch.nn.Linear(in, out) default init."""
    kw, kb = jax.random.split(key)
    bound = 1.0 / jnp.sqrt(jnp.float32(IN_SIZE))
    weight = jax.random.uniform(
        kw, (OUT_SIZE, IN_SIZE), jnp.float32, minval=-bound, maxval=bound
    )
    bias = jax.random.uniform(
        kb, (OUT_SIZE,), jnp.float32, minval=-bound, maxval=bound
    )
    return weight, bias


if __name__ == "__main__":
    key = jax.random.PRNGKey(0)
    k_x, k_p = jax.random.split(key)

    B = 2
    x = jax.random.normal(k_x, (B, 3, 64, 64), jnp.float32)
    weight, bias = init_params(k_p)

    out = linear_classifier(x, weight, bias)
    out = jax.block_until_ready(out)

    # Reference check in plain JAX.
    ref = x.reshape(B, -1) @ weight.T + bias
    assert out.shape == (B, OUT_SIZE)
    assert jnp.allclose(out, ref, atol=1e-4, rtol=1e-4)

    print("KERNEL_OK")
</pallas_src>

<mosaic_0001>
module attributes {stable_mosaic.version = 11 : i64} {
  func.func @linear_kernel(%arg0: i32, %arg1: memref<2x12288xf32, #tpu.memory_space<vmem>>, %arg2: memref<6x12288xf32, #tpu.memory_space<vmem>>, %arg3: memref<1x6xf32, #tpu.memory_space<vmem>>, %arg4: memref<2x6xf32, #tpu.memory_space<vmem>>) attributes {dimension_semantics = [#tpu.dimension_semantics<arbitrary>], iteration_bounds = array<i64: 1>, scalar_prefetch = 0 : i64, scratch_operands = 0 : i64, tpu.core_type = #tpu.core_type<tc>, window_params = [{transform_indices = @transform_0, window_bounds = array<i64: 2, 12288>}, {pipeline_mode = #tpu.pipeline_mode<synchronous>, transform_indices = @transform_1, window_bounds = array<i64: 6, 12288>}, {pipeline_mode = #tpu.pipeline_mode<synchronous>, transform_indices = @transform_2, window_bounds = array<i64: 1, 6>}, {transform_indices = @transform_3, window_bounds = array<i64: 2, 6>}]} {
    %c0 = arith.constant 0 : index
    %c0_0 = arith.constant 0 : index
    %0 = vector.load %arg1[%c0, %c0_0] : memref<2x12288xf32, #tpu.memory_space<vmem>>, vector<2x12288xf32>
    %c0_1 = arith.constant 0 : index
    %c0_2 = arith.constant 0 : index
    %1 = vector.load %arg2[%c0_1, %c0_2] : memref<6x12288xf32, #tpu.memory_space<vmem>>, vector<6x12288xf32>
    %cst = arith.constant dense<0.000000e+00> : vector<2x6xf32>
    %2 = tpu.matmul %0, %1, %cst {dimension_numbers = #tpu.dot_dimension_numbers<[1], [1], [0], [0], [0, 0, 1, 0], [], []>} : vector<2x12288xf32>, vector<6x12288xf32>, vector<2x6xf32> -> vector<2x6xf32>
    %c0_3 = arith.constant 0 : index
    %c0_4 = arith.constant 0 : index
    %3 = vector.load %arg3[%c0_3, %c0_4] : memref<1x6xf32, #tpu.memory_space<vmem>>, vector<1x6xf32>
    %4 = vector.broadcast %3 : vector<1x6xf32> to vector<2x6xf32>
    %5 = arith.addf %2, %4 : vector<2x6xf32>
    %c0_5 = arith.constant 0 : index
    %c0_6 = arith.constant 0 : index
    %6 = vector.load %arg4[%c0_5, %c0_6] : memref<2x6xf32, #tpu.memory_space<vmem>>, vector<2x6xf32>
    tpu.vector_store %arg4[%c0_5, %c0_6], %5 {strides = array<i32>} : memref<2x6xf32, #tpu.memory_space<vmem>>, vector<2x6xf32>,
    return
  }
  func.func @transform_0(%arg0: i32) -> (i32, i32) {
    %c0_i32 = arith.constant 0 : i32
    %c0_i32_0 = arith.constant 0 : i32
    return %arg0, %c0_i32 : i32, i32
  }
  func.func @transform_1(%arg0: i32) -> (i32, i32) {
    %c0_i32 = arith.constant 0 : i32
    %c0_i32_0 = arith.constant 0 : i32
    %c0_i32_1 = arith.constant 0 : i32
    return %c0_i32, %c0_i32_0 : i32, i32
  }
  func.func @transform_2(%arg0: i32) -> (i32, i32) {
    %c0_i32 = arith.constant 0 : i32
    %c0_i32_0 = arith.constant 0 : i32
    %c0_i32_1 = arith.constant 0 : i32
    return %c0_i32, %c0_i32_0 : i32, i32
  }
  func.func @transform_3(%arg0: i32) -> (i32, i32) {
    %c0_i32 = arith.constant 0 : i32
    %c0_i32_0 = arith.constant 0 : i32
    return %arg0, %c0_i32 : i32, i32
  }
}

</mosaic_0001>

<bundles_post_ra>
// kernel: tpu_custom_call.1
= control target key start
LH: loop header
LB: loop body
LE: loop exit
PB: predicated region body
PF: predicated region fallthrough
CT: control target
= control target key end

     0   :  { %8 = vsyncpa [#allocation3], 0  ;;  %s4424_s0 = inlined_call_operand.hbm [shape: f32[2,12288], index: 0, kind: input, shape index: {}]   ;;  %s4425_s1 = inlined_call_operand.hbm [shape: f32[6,12288], index: 1, kind: input, shape index: {}]   ;;  %s4426_s2 = inlined_call_operand.hbm [shape: f32[1,6], index: 2, kind: input, shape index: {}]   ;;  %s4427_s3 = inlined_call_operand.hbm [shape: f32[2,6], index: 3, kind: output, shape index: {}]  }
   0x1   :  { %9 = vsyncpa [#allocation6], 0 }
   0x2   :  { %10 = vsyncpa [#allocation4], 0  ;;  %s4301_s12 = smov [#allocation5]   ;;  %s4302_s14 = smov [#allocation2]  }
   0x3   :  { %s27_s13 = sshll.u32 %s4301_s12, 4  ;;  %s17_s15 = sshll.u32 %s4302_s14, 4  ;;  %s28_s13 = int_to_ptr.vmem [resolvable:$true] %s27_s13  ;;  %s18_s15 = int_to_ptr.vmem [resolvable:$true] %s17_s15 }
   0x4   :  { %s4207_s18 = scalar_lea.hbm %s4425_s1, 12288 }
   0x5   :  { %p4208_p0 = scmp.ne.s32.totalorder %s4425_s1, %s4207_s18  ;;  %p4211_p1 = scmp.lt.u32.totalorder %s4207_s18, %s4425_s1 }
   0x7   :  { %p4213_p2 = pnand %p4211_p1, %p4208_p0 }
   0x9   :  { %4216 = shalt.err (!%p4213_p2)
}
   0xa   :  { %s4217_s23 = scalar_lea.vmem %s28_s13, 12288  ;;  %p4222_p4 = scmp.lt.s32.totalorder %s28_s13, %s28_s13 }
   0xb   :  { %p4218_p3 = scmp.ne.s32.totalorder %s28_s13, %s4217_s23  ;;  %p4223_p5 = scmp.lt.s32.totalorder %s4217_s23, %s4217_s23 }
   0xd   :  { %p4224_p6 = por %p4223_p5, %p4222_p4 }
   0xf   :  { %p4225_p7 = pnand %p4224_p6, %p4218_p3 }
  0x11   :  { %4228 = shalt.err (!%p4225_p7)
}
  0x12   :  { %30 = dma.hbm_to_vmem [thread:$0]  %s4425_s1, 12288, %s28_s13, [#allocation6]  }
  0x13   :  { %s4229_s28 = scalar_lea.hbm %s4424_s0, 3072 }
  0x14   :  { %p4230_p8 = scmp.ne.s32.totalorder %s4424_s0, %s4229_s28  ;;  %p4233_p9 = scmp.lt.u32.totalorder %s4229_s28, %s4424_s0 }
  0x16   :  { %p4235_p10 = pnand %p4233_p9, %p4230_p8 }
  0x18   :  { %4238 = shalt.err (!%p4235_p10)
}
  0x19   :  { %s4239_s6 = scalar_lea.vmem %s18_s15, 3072  ;;  %p4244_p12 = scmp.lt.s32.totalorder %s18_s15, %s18_s15 }
  0x1a   :  { %p4240_p11 = scmp.ne.s32.totalorder %s18_s15, %s4239_s6  ;;  %p4245_p13 = scmp.lt.s32.totalorder %s4239_s6, %s4239_s6 }
  0x1c   :  { %p4246_p0 = por %p4245_p13, %p4244_p12 }
  0x1e   :  { %p4247_p1 = pnand %p4246_p0, %p4240_p11 }
  0x20   :  { %4250 = shalt.err (!%p4247_p1)
}
  0x21   :  { %20 = dma.hbm_to_vmem [thread:$0]  %s4424_s0, 3072, %s18_s15, [#allocation3]  }
  0x22   :  { %s4303_s8 = smov [#allocation7]   ;;  %s4251_s12 = scalar_lea.hbm %s4426_s2, 16 }
  0x23   :  { %s37_s9 = sshll.u32 %s4303_s8, 4  ;;  %p4252_p2 = scmp.ne.s32.totalorder %s4426_s2, %s4251_s12  ;;  %s38_s9 = int_to_ptr.vmem [resolvable:$true] %s37_s9 }
  0x24   :  { %p4255_p3 = scmp.lt.u32.totalorder %s4251_s12, %s4426_s2 }
  0x26   :  { %p4257_p4 = pnand %p4255_p3, %p4252_p2 }
  0x28   :  { %4260 = shalt.err (!%p4257_p4)
}
  0x29   :  { %s4261_s18 = scalar_lea.vmem %s38_s9, 16  ;;  %s4265_s0 = scalar_lea.vmem %s38_s9, 32 }
  0x2a   :  { %p4262_p5 = scmp.ne.s32.totalorder %s38_s9, %s4261_s18  ;;  %p4266_p6 = scmp.lt.s32.totalorder %s38_s9, %s38_s9 }
  0x2b   :  { %p4267_p7 = scmp.lt.s32.totalorder %s4265_s0, %s4261_s18 }
  0x2d   :  { %p4268_p8 = por %p4267_p7, %p4266_p6 }
  0x2f   :  { %p4269_p9 = pnand %p4268_p8, %p4262_p5 }
  0x31   :  { %4272 = shalt.err (!%p4269_p9)
}
  0x32   :  { %40 = dma.hbm_to_vmem [thread:$0]  %s4426_s2, 16, %s38_s9, [#allocation6]  }
  0x33   :  { %4295 = dma.done.wait [#allocation3], 3072  }
  0x34   :  { %4296 = vsyncadd [#allocation3], 4294964224 }
  0x35   :  { %4297 = dma.done.wait [#allocation6], 12304  }
  0x36   :  { %4298 = vsyncadd [#allocation6], 4294954992  ;;  %v205_v0 = vlaneseq  ;;  %v4304_v1 = vmov 1983009808   ;;  %v75_v6 = vld [vmem:[#allocation5 + $0x8] sm:$0x3f] }
  0x37   :  { %v203_v2 = vunpack.c.l.s4 %v4304_v1  ;;  %v74_v7 = vld [vmem:[#allocation5] sm:$0x3f]  ;;  %v123_v8 = vld [vmem:[#allocation5 + $0x188] sm:$0x3f]  ;;  %705 = vmatprep.subr.mxu1 %v75_v6  ;;  %v77_v11 = vld [vmem:[#allocation5 + $0x18] sm:$0x3f] }
  0x38   :  { %v206_v3 = vshrl.u32 %v205_v0, 7  ;;  %2385 = vmatprep.subr.mxu0 %v123_v8  ;;  %v122_v9 = vld [vmem:[#allocation5 + $0x180] sm:$0x3f]  ;;  %706 = vmatpush1.xpose.msra.mxu1 %v74_v7  ;;  %v125_v15 = vld [vmem:[#allocation5 + $0x198] sm:$0x3f]  ;;  %v51_v25 = vld [vmem:[#allocation2 + $0x8] sm:$0xff] }
  0x39   :  { %v204_v4 = vunpack.c.0.s8 %v203_v2  ;;  %v50_v10 = vld [vmem:[#allocation2] sm:$0xff]  ;;  %2386 = vmatpush1.xpose.msra.mxu0 %v122_v9  ;;  %775 = vmatprep.subr.mxu1 %v77_v11  ;;  %v76_v21 = vld [vmem:[#allocation5 + $0x10] sm:$0x3f]  ;;  %v79_v26 = vld [vmem:[#allocation5 + $0x28] sm:$0x3f]  ;;  %v218_v34 = vcombine.high %v51_v25, %v51_v25  ;;  %s4305_s2 = smov [#allocation8]  }
  0x3a   :  { %v201_v12 = vcombine.high %v50_v10, %v50_v10  ;;  %v62_v14 = vld [vmem:[#allocation2 + $0x60] sm:$0xff]  ;;  %2455 = vmatprep.subr.mxu0 %v125_v15  ;;  %v124_v23 = vld [vmem:[#allocation5 + $0x190] sm:$0x3f]  ;;  %v63_v28 = vld [vmem:[#allocation2 + $0x68] sm:$0xff]  ;;  %s4073_s20 = sshll.u32 %s4305_s2, 4  ;;  %vm4065_vm0 = vcmask 41984   ;;  %s4074_s20 = int_to_ptr.vmem [resolvable:$true] %s4073_s20 }
  0x3b   :  { %v4362_v5 = vsub.s32 %v204_v4, %v206_v3  ;;  %v405_v16 = vcombine.high %v62_v14, %v62_v14  ;;  %v127_v29 = vld [vmem:[#allocation5 + $0x1a8] sm:$0x3f]  ;;  %v78_v32 = vld [vmem:[#allocation5 + $0x20] sm:$0x3f]  ;;  %v422_v37 = vcombine.high %v63_v28, %v63_v28  ;;  %v81_v38 = vld [vmem:[#allocation5 + $0x38] sm:$0x3f]  ;;  %p4278_p11 = scmp.lt.s32.totalorder %s4074_s20, %s4074_s20 }
  0x3c   :  { %v126_v35 = vld [vmem:[#allocation5 + $0x1a0] sm:$0x3f]  ;;  %v129_v39 = vld [vmem:[#allocation5 + $0x1b8] sm:$0x3f]  ;;  %v80_v42 = vld [vmem:[#allocation5 + $0x30] sm:$0x3f] }
  0x3d   :  { %v208_v13 = vrot.slane %v50_v10, %v4362_v5  ;;  %v412_v17 = vrot.slane %v62_v14, %v4362_v5  ;;  %v215_v19 = vrot.slane %v201_v12, %v4362_v5  ;;  %v419_v22 = vrot.slane %v405_v16, %v4362_v5  ;;  %v128_v44 = vld [vmem:[#allocation5 + $0x1b0] sm:$0x3f]  ;;  %v83_v47 = vld [vmem:[#allocation5 + $0x48] sm:$0x3f]  ;;  %v82_v52 = vld [vmem:[#allocation5 + $0x40] sm:$0x3f] }
  0x3e   :  { %v225_v30 = vrot.slane %v51_v25, %v4362_v5  ;;  %v429_v31 = vrot.slane %v63_v28, %v4362_v5  ;;  %v232_v40 = vrot.slane %v218_v34, %v4362_v5  ;;  %v436_v41 = vrot.slane %v422_v37, %v4362_v5  ;;  %v52_v46 = vld [vmem:[#allocation2 + $0x10] sm:$0xff]  ;;  %v131_v49 = vld [vmem:[#allocation5 + $0x1c8] sm:$0x3f]  ;;  %v130_v55 = vld [vmem:[#allocation5 + $0x1c0] sm:$0x3f]  ;;  %s4273_s21 = scalar_lea.vmem %s4074_s20, 32 }
  0x3f   :  { %v216_v18 = vcombine.high %v208_v13, %v208_v13  ;;  %v420_v20 = vcombine.high %v412_v17, %v412_v17  ;;  %v217_v24 = vcombine.high %v215_v19, %v215_v19  ;;  %v421_v27 = vcombine.high %v419_v22, %v419_v22  ;;  %v64_v48 = vld [vmem:[#allocation2 + $0x70] sm:$0xff]  ;;  %v85_v58 = vld [vmem:[#allocation5 + $0x58] sm:$0x3f]  ;;  %v87_v3 = vld [vmem:[#allocation5 + $0x68] sm:$0x3f]  ;;  %p4274_p10 = scmp.ne.s32.totalorder %s4074_s20, %s4273_s21  ;;  %p4279_p12 = scmp.lt.s32.totalorder %s4273_s21, %s4273_s21 }
  0x40   :  { %v233_v33 = vcombine.high %v225_v30, %v225_v30  ;;  %v437_v36 = vcombine.high %v429_v31, %v429_v31  ;;  %v234_v43 = vcombine.high %v232_v40, %v232_v40  ;;  %v438_v45 = vcombine.high %v436_v41, %v436_v41  ;;  %v133_v59 = vld [vmem:[#allocation5 + $0x1d8] sm:$0x3f]  ;;  %v84_v62 = vld [vmem:[#allocation5 + $0x50] sm:$0x3f]  ;;  %v135_v6 = vld [vmem:[#allocation5 + $0x1e8] sm:$0x3f] }
  0x41   :  { %769 = vmatprep.mubr.f32.mxu1 %v216_v18  ;;  %2449 = vmatprep.mubr.f32.mxu0 %v420_v20  ;;  %v242_v50 = vrot.slane %v52_v46, %v4362_v5  ;;  %v446_v51 = vrot.slane %v64_v48, %v4362_v5  ;;  %v235_v54 = vcombine.high %v52_v46, %v52_v46  ;;  %v132_v0 = vld [vmem:[#allocation5 + $0x1d0] sm:$0x3f]  ;;  %v53_v2 = vld [vmem:[#allocation2 + $0x18] sm:$0xff]  ;;  %v86_v9 = vld [vmem:[#allocation5 + $0x60] sm:$0x3f]  ;;  %p4280_p13 = por %p4279_p12, %p4278_p11 }
  0x42   :  { %770 = vmatmul.mubr.f32.vlgmr.msra.gmra.mrb[0].mxu1 %v208_v13  ;;  %2450 = vmatmul.mubr.f32.vlgmr.msra.gmra.mrb[0].mxu0 %v412_v17  ;;  %v439_v57 = vcombine.high %v64_v48, %v64_v48  ;;  %v65_v4 = vld [vmem:[#allocation2 + $0x78] sm:$0xff]  ;;  %v259_v7 = vrot.slane %v53_v2, %v4362_v5  ;;  %v252_v11 = vcombine.high %v53_v2, %v53_v2  ;;  %v134_v12 = vld [vmem:[#allocation5 + $0x1e0] sm:$0x3f]  ;;  %v143_v46 = vld [vmem:[#allocation5 + $0x228] sm:$0x3f] }
  0x43   :  { %776 = vmatpush1.xpose.msra.mxu1 %v76_v21  ;;  %2456 = vmatpush1.xpose.msra.mxu0 %v124_v23  ;;  %v250_v53 = vcombine.high %v242_v50, %v242_v50  ;;  %v454_v56 = vcombine.high %v446_v51, %v446_v51  ;;  %v249_v60 = vrot.slane %v235_v54, %v4362_v5  ;;  %v89_v15 = vld [vmem:[#allocation5 + $0x78] sm:$0x3f]  ;;  %v136_v21 = vld [vmem:[#allocation5 + $0x1f0] sm:$0x3f]  ;;  %v54_v23 = vld [vmem:[#allocation2 + $0x20] sm:$0xff]  ;;  %p4281_p0 = pnand %p4280_p13, %p4274_p10 }
  0x44   :  { %839 = vmatprep.mubr.f32.mxu1 %v217_v24  ;;  %845 = vmatprep.subr.mxu1 %v79_v26  ;;  %v453_v61 = vrot.slane %v439_v57, %v4362_v5  ;;  %v463_v8 = vrot.slane %v65_v4, %v4362_v5  ;;  %v267_v10 = vcombine.high %v259_v7, %v259_v7  ;;  %v137_v16 = vld [vmem:[#allocation5 + $0x1f8] sm:$0x3f]  ;;  %v91_v24 = vld [vmem:[#allocation5 + $0x88] sm:$0x3f]  ;;  %v66_v25 = vld [vmem:[#allocation2 + $0x80] sm:$0xff] }
  0x45   :  { %2519 = vmatprep.mubr.f32.mxu0 %v421_v27  ;;  %2525 = vmatprep.subr.mxu0 %v127_v29  ;;  %v251_v63 = vcombine.high %v249_v60, %v249_v60  ;;  %v456_v14 = vcombine.high %v65_v4, %v65_v4  ;;  %v266_v17 = vrot.slane %v252_v11, %v4362_v5  ;;  %v139_v26 = vld [vmem:[#allocation5 + $0x208] sm:$0x3f]  ;;  %v90_v29 = vld [vmem:[#allocation5 + $0x80] sm:$0x3f] }
  0x46   :  { %v455_v1 = vcombine.high %v453_v61, %v453_v61  ;;  %v471_v13 = vcombine.high %v463_v8, %v463_v8  ;;  %v276_v27 = vrot.slane %v54_v23, %v4362_v5  ;;  %v480_v28 = vrot.slane %v66_v25, %v4362_v5  ;;  %v147_v2 = vld [vmem:[#allocation5 + $0x248] sm:$0x3f] }
  0x47   :  { %v470_v18 = vrot.slane %v456_v14, %v4362_v5  ;;  %v268_v20 = vcombine.high %v266_v17, %v266_v17  ;;  %v473_v34 = vcombine.high %v66_v25, %v66_v25 }
  0x4a   :  { %840 = vmatmul.mubr.f32.vlgmr.msra.gmra.mrb[0].mxu1 %v215_v19  ;;  %2520 = vmatmul.mubr.f32.vlgmr.msra.gmra.mrb[0].mxu0 %v419_v22  ;;  %v88_v19 = vld [vmem:[#allocation5 + $0x70] sm:$0x3f]  ;;  %v472_v22 = vcombine.high %v470_v18, %v470_v18 }
  0x4b   :  { %846 = vmatpush1.xpose.msra.mxu1 %v78_v32  ;;  %2526 = vmatpush1.xpose.msra.mxu0 %v126_v35  ;;  %v138_v32 = vld [vmem:[#allocation5 + $0x200] sm:$0x3f]  ;;  %v93_v35 = vld [vmem:[#allocation5 + $0x98] sm:$0x3f] }
  0x4c   :  { %909 = vmatprep.mubr.f32.mxu1 %v233_v33  ;;  %915 = vmatprep.subr.mxu1 %v81_v38  ;;  %v488_v33 = vcombine.high %v480_v28, %v480_v28  ;;  %v487_v38 = vrot.slane %v473_v34, %v4362_v5 }
  0x4d   :  { %2589 = vmatprep.mubr.f32.mxu0 %v437_v36  ;;  %2595 = vmatprep.subr.mxu0 %v129_v39  ;;  %v141_v36 = vld [vmem:[#allocation5 + $0x218] sm:$0x3f]  ;;  %v92_v39 = vld [vmem:[#allocation5 + $0x90] sm:$0x3f] }
  0x52   :  { %910 = vmatmul.mubr.f32.vlgmr.msra.gmra.mrb[0].mxu1 %v225_v30  ;;  %2590 = vmatmul.mubr.f32.vlgmr.msra.gmra.mrb[0].mxu0 %v429_v31  ;;  %v284_v30 = vcombine.high %v276_v27, %v276_v27  ;;  %v269_v31 = vcombine.high %v54_v23, %v54_v23  ;;  %v151_v23 = vld [vmem:[#allocation5 + $0x268] sm:$0x3f] }
  0x53   :  { %916 = vmatpush1.xpose.msra.mxu1 %v80_v42  ;;  %2596 = vmatpush1.xpose.msra.mxu0 %v128_v44  ;;  %v489_v42 = vcombine.high %v487_v38, %v487_v38  ;;  %v95_v44 = vld [vmem:[#allocation5 + $0xa8] sm:$0x3f] }
  0x54   :  { %979 = vmatprep.mubr.f32.mxu1 %v234_v43  ;;  %985 = vmatprep.subr.mxu1 %v83_v47  ;;  %v283_v37 = vrot.slane %v269_v31, %v4362_v5  ;;  %v55_v43 = vld [vmem:[#allocation2 + $0x28] sm:$0xff] }
  0x55   :  { %2659 = vmatprep.mubr.f32.mxu0 %v438_v45  ;;  %2665 = vmatprep.subr.mxu0 %v131_v49  ;;  %v67_v45 = vld [vmem:[#allocation2 + $0x88] sm:$0xff]  ;;  %v293_v47 = vrot.slane %v55_v43, %v4362_v5  ;;  %v94_v49 = vld [vmem:[#allocation5 + $0xa0] sm:$0x3f] }
  0x56   :  { %v497_v48 = vrot.slane %v67_v45, %v4362_v5  ;;  %v490_v54 = vcombine.high %v67_v45, %v67_v45 }
  0x5a   :  { %980 = vmatmul.mubr.f32.vlgmr.msra.gmra.mrb[0].mxu1 %v232_v40  ;;  %2660 = vmatmul.mubr.f32.vlgmr.msra.gmra.mrb[0].mxu0 %v436_v41  ;;  %v285_v40 = vcombine.high %v283_v37, %v283_v37  ;;  %v140_v41 = vld [vmem:[#allocation5 + $0x210] sm:$0x3f] }
  0x5b   :  { %986 = vmatpush1.xpose.msra.mxu1 %v82_v52  ;;  %2666 = vmatpush1.xpose.msra.mxu0 %v130_v55  ;;  %v142_v52 = vld [vmem:[#allocation5 + $0x220] sm:$0x3f]  ;;  %v97_v55 = vld [vmem:[#allocation5 + $0xb8] sm:$0x3f] }
  0x5c   :  { %1049 = vmatprep.mubr.f32.mxu1 %v250_v53  ;;  %1055 = vmatprep.subr.mxu1 %v85_v58  ;;  %v505_v53 = vcombine.high %v497_v48, %v497_v48  ;;  %v504_v58 = vrot.slane %v490_v54, %v4362_v5 }
  0x5d   :  { %2729 = vmatprep.mubr.f32.mxu0 %v454_v56  ;;  %2735 = vmatprep.subr.mxu0 %v133_v59  ;;  %v145_v56 = vld [vmem:[#allocation5 + $0x238] sm:$0x3f]  ;;  %v96_v59 = vld [vmem:[#allocation5 + $0xb0] sm:$0x3f] }
  0x62   :  { %1050 = vmatmul.mubr.f32.vlgmr.msra.gmra.mrb[0].mxu1 %v242_v50  ;;  %2730 = vmatmul.mubr.f32.vlgmr.msra.gmra.mrb[0].mxu0 %v446_v51  ;;  %v301_v50 = vcombine.high %v293_v47, %v293_v47  ;;  %v286_v51 = vcombine.high %v55_v43, %v55_v43  ;;  %v155_v43 = vld [vmem:[#allocation5 + $0x288] sm:$0x3f] }
  0x63   :  { %1056 = vmatpush1.xpose.msra.mxu1 %v84_v62  ;;  %2736 = vmatpush1.xpose.msra.mxu0 %v132_v0  ;;  %v506_v62 = vcombine.high %v504_v58, %v504_v58  ;;  %v99_v0 = vld [vmem:[#allocation5 + $0xc8] sm:$0x3f] }
  0x64   :  { %1119 = vmatprep.mubr.f32.mxu1 %v251_v63  ;;  %1125 = vmatprep.subr.mxu1 %v87_v3  ;;  %v300_v57 = vrot.slane %v286_v51, %v4362_v5  ;;  %v56_v63 = vld [vmem:[#allocation2 + $0x30] sm:$0xff] }
  0x65   :  { %2799 = vmatprep.mubr.f32.mxu0 %v455_v1  ;;  %2805 = vmatprep.subr.mxu0 %v135_v6  ;;  %v68_v1 = vld [vmem:[#allocation2 + $0x90] sm:$0xff]  ;;  %v310_v3 = vrot.slane %v56_v63, %v4362_v5  ;;  %v98_v6 = vld [vmem:[#allocation5 + $0xc0] sm:$0x3f] }
  0x66   :  { %v514_v4 = vrot.slane %v68_v1, %v4362_v5  ;;  %v507_v11 = vcombine.high %v68_v1, %v68_v1 }
  0x6a   :  { %1120 = vmatmul.mubr.f32.vlgmr.msra.gmra.mrb[0].mxu1 %v249_v60  ;;  %2800 = vmatmul.mubr.f32.vlgmr.msra.gmra.mrb[0].mxu0 %v453_v61  ;;  %v302_v60 = vcombine.high %v300_v57, %v300_v57  ;;  %v144_v61 = vld [vmem:[#allocation5 + $0x230] sm:$0x3f] }
  0x6b   :  { %1126 = vmatpush1.xpose.msra.mxu1 %v86_v9  ;;  %2806 = vmatpush1.xpose.msra.mxu0 %v134_v12  ;;  %v146_v9 = vld [vmem:[#allocation5 + $0x240] sm:$0x3f]  ;;  %v101_v12 = vld [vmem:[#allocation5 + $0xd8] sm:$0x3f] }
  0x6c   :  { %1189 = vmatprep.mubr.f32.mxu1 %v267_v10  ;;  %1195 = vmatprep.subr.mxu1 %v89_v15  ;;  %v522_v10 = vcombine.high %v514_v4, %v514_v4  ;;  %v521_v15 = vrot.slane %v507_v11, %v4362_v5 }
  0x6d   :  { %2869 = vmatprep.mubr.f32.mxu0 %v471_v13  ;;  %2875 = vmatprep.subr.mxu0 %v137_v16  ;;  %v149_v13 = vld [vmem:[#allocation5 + $0x258] sm:$0x3f]  ;;  %v100_v16 = vld [vmem:[#allocation5 + $0xd0] sm:$0x3f] }
  0x72   :  { %1190 = vmatmul.mubr.f32.vlgmr.msra.gmra.mrb[0].mxu1 %v259_v7  ;;  %2870 = vmatmul.mubr.f32.vlgmr.msra.gmra.mrb[0].mxu0 %v463_v8  ;;  %v318_v7 = vcombine.high %v310_v3, %v310_v3  ;;  %v303_v8 = vcombine.high %v56_v63, %v56_v63  ;;  %v159_v63 = vld [vmem:[#allocation5 + $0x2a8] sm:$0x3f] }
  0x73   :  { %1196 = vmatpush1.xpose.msra.mxu1 %v88_v19  ;;  %2876 = vmatpush1.xpose.msra.mxu0 %v136_v21  ;;  %v523_v19 = vcombine.high %v521_v15, %v521_v15  ;;  %v103_v21 = vld [vmem:[#allocation5 + $0xe8] sm:$0x3f] }
  0x74   :  { %1259 = vmatprep.mubr.f32.mxu1 %v268_v20  ;;  %1265 = vmatprep.subr.mxu1 %v91_v24  ;;  %v317_v14 = vrot.slane %v303_v8, %v4362_v5  ;;  %v57_v20 = vld [vmem:[#allocation2 + $0x38] sm:$0xff] }
  0x75   :  { %2939 = vmatprep.mubr.f32.mxu0 %v472_v22  ;;  %2945 = vmatprep.subr.mxu0 %v139_v26  ;;  %v69_v22 = vld [vmem:[#allocation2 + $0x98] sm:$0xff]  ;;  %v327_v24 = vrot.slane %v57_v20, %v4362_v5  ;;  %v102_v26 = vld [vmem:[#allocation5 + $0xe0] sm:$0x3f] }
  0x76   :  { %v531_v25 = vrot.slane %v69_v22, %v4362_v5  ;;  %v524_v31 = vcombine.high %v69_v22, %v69_v22 }
  0x7a   :  { %1260 = vmatmul.mubr.f32.vlgmr.msra.gmra.mrb[0].mxu1 %v266_v17  ;;  %2940 = vmatmul.mubr.f32.vlgmr.msra.gmra.mrb[0].mxu0 %v470_v18  ;;  %v319_v17 = vcombine.high %v317_v14, %v317_v14  ;;  %v148_v18 = vld [vmem:[#allocation5 + $0x250] sm:$0x3f] }
  0x7b   :  { %1266 = vmatpush1.xpose.msra.mxu1 %v90_v29  ;;  %2946 = vmatpush1.xpose.msra.mxu0 %v138_v32  ;;  %v150_v29 = vld [vmem:[#allocation5 + $0x260] sm:$0x3f]  ;;  %v105_v32 = vld [vmem:[#allocation5 + $0xf8] sm:$0x3f] }
  0x7c   :  { %1329 = vmatprep.mubr.f32.mxu1 %v284_v30  ;;  %1335 = vmatprep.subr.mxu1 %v93_v35  ;;  %v539_v30 = vcombine.high %v531_v25, %v531_v25  ;;  %v538_v35 = vrot.slane %v524_v31, %v4362_v5 }
  0x7d   :  { %3009 = vmatprep.mubr.f32.mxu0 %v488_v33  ;;  %3015 = vmatprep.subr.mxu0 %v141_v36  ;;  %v153_v33 = vld [vmem:[#allocation5 + $0x278] sm:$0x3f]  ;;  %v104_v36 = vld [vmem:[#allocation5 + $0xf0] sm:$0x3f] }
  0x82   :  { %1330 = vmatmul.mubr.f32.vlgmr.msra.gmra.mrb[0].mxu1 %v276_v27  ;;  %3010 = vmatmul.mubr.f32.vlgmr.msra.gmra.mrb[0].mxu0 %v480_v28  ;;  %v335_v27 = vcombine.high %v327_v24, %v327_v24  ;;  %v320_v28 = vcombine.high %v57_v20, %v57_v20  ;;  %v163_v20 = vld [vmem:[#allocation5 + $0x2c8] sm:$0x3f] }
  0x83   :  { %1336 = vmatpush1.xpose.msra.mxu1 %v92_v39  ;;  %3016 = vmatpush1.xpose.msra.mxu0 %v140_v41  ;;  %v540_v39 = vcombine.high %v538_v35, %v538_v35  ;;  %v107_v41 = vld [vmem:[#allocation5 + $0x108] sm:$0x3f] }
  0x84   :  { %1399 = vmatprep.mubr.f32.mxu1 %v285_v40  ;;  %1405 = vmatprep.subr.mxu1 %v95_v44  ;;  %v334_v34 = vrot.slane %v320_v28, %v4362_v5  ;;  %v58_v40 = vld [vmem:[#allocation2 + $0x40] sm:$0xff] }
  0x85   :  { %3079 = vmatprep.mubr.f32.mxu0 %v489_v42  ;;  %3085 = vmatprep.subr.mxu0 %v143_v46  ;;  %v70_v42 = vld [vmem:[#allocation2 + $0xa0] sm:$0xff]  ;;  %v344_v44 = vrot.slane %v58_v40, %v4362_v5 }
  0x86   :  { %v548_v45 = vrot.slane %v70_v42, %v4362_v5  ;;  %v106_v46 = vld [vmem:[#allocation5 + $0x100] sm:$0x3f]  ;;  %v541_v51 = vcombine.high %v70_v42, %v70_v42 }
  0x8a   :  { %1400 = vmatmul.mubr.f32.vlgmr.msra.gmra.mrb[0].mxu1 %v283_v37  ;;  %3080 = vmatmul.mubr.f32.vlgmr.msra.gmra.mrb[0].mxu0 %v487_v38  ;;  %v336_v37 = vcombine.high %v334_v34, %v334_v34  ;;  %v152_v38 = vld [vmem:[#allocation5 + $0x270] sm:$0x3f] }
  0x8b   :  { %1406 = vmatpush1.xpose.msra.mxu1 %v94_v49  ;;  %3086 = vmatpush1.xpose.msra.mxu0 %v142_v52  ;;  %v154_v49 = vld [vmem:[#allocation5 + $0x280] sm:$0x3f]  ;;  %v109_v52 = vld [vmem:[#allocation5 + $0x118] sm:$0x3f] }
  0x8c   :  { %1469 = vmatprep.mubr.f32.mxu1 %v301_v50  ;;  %1475 = vmatprep.subr.mxu1 %v97_v55  ;;  %v556_v50 = vcombine.high %v548_v45, %v548_v45  ;;  %v555_v55 = vrot.slane %v541_v51, %v4362_v5 }
  0x8d   :  { %3149 = vmatprep.mubr.f32.mxu0 %v505_v53  ;;  %3155 = vmatprep.subr.mxu0 %v145_v56  ;;  %v157_v53 = vld [vmem:[#allocation5 + $0x298] sm:$0x3f]  ;;  %v108_v56 = vld [vmem:[#allocation5 + $0x110] sm:$0x3f] }
  0x92   :  { %1470 = vmatmul.mubr.f32.vlgmr.msra.gmra.mrb[0].mxu1 %v293_v47  ;;  %3150 = vmatmul.mubr.f32.vlgmr.msra.gmra.mrb[0].mxu0 %v497_v48  ;;  %v352_v47 = vcombine.high %v344_v44, %v344_v44  ;;  %v337_v48 = vcombine.high %v58_v40, %v58_v40  ;;  %v167_v40 = vld [vmem:[#allocation5 + $0x2e8] sm:$0x3f] }
  0x93   :  { %1476 = vmatpush1.xpose.msra.mxu1 %v96_v59  ;;  %3156 = vmatpush1.xpose.msra.mxu0 %v144_v61  ;;  %v557_v59 = vcombine.high %v555_v55, %v555_v55  ;;  %v111_v61 = vld [vmem:[#allocation5 + $0x128] sm:$0x3f] }
  0x94   :  { %1539 = vmatprep.mubr.f32.mxu1 %v302_v60  ;;  %1545 = vmatprep.subr.mxu1 %v99_v0  ;;  %v351_v54 = vrot.slane %v337_v48, %v4362_v5  ;;  %v59_v60 = vld [vmem:[#allocation2 + $0x48] sm:$0xff] }
  0x95   :  { %3219 = vmatprep.mubr.f32.mxu0 %v506_v62  ;;  %3225 = vmatprep.subr.mxu0 %v147_v2  ;;  %v71_v62 = vld [vmem:[#allocation2 + $0xa8] sm:$0xff]  ;;  %v361_v0 = vrot.slane %v59_v60, %v4362_v5  ;;  %v110_v2 = vld [vmem:[#allocation5 + $0x120] sm:$0x3f] }
  0x96   :  { %v565_v1 = vrot.slane %v71_v62, %v4362_v5  ;;  %v558_v8 = vcombine.high %v71_v62, %v71_v62 }
  0x9a   :  { %1540 = vmatmul.mubr.f32.vlgmr.msra.gmra.mrb[0].mxu1 %v300_v57  ;;  %3220 = vmatmul.mubr.f32.vlgmr.msra.gmra.mrb[0].mxu0 %v504_v58  ;;  %v353_v57 = vcombine.high %v351_v54, %v351_v54  ;;  %v156_v58 = vld [vmem:[#allocation5 + $0x290] sm:$0x3f] }
  0x9b   :  { %1546 = vmatpush1.xpose.msra.mxu1 %v98_v6  ;;  %3226 = vmatpush1.xpose.msra.mxu0 %v146_v9  ;;  %v158_v6 = vld [vmem:[#allocation5 + $0x2a0] sm:$0x3f]  ;;  %v113_v9 = vld [vmem:[#allocation5 + $0x138] sm:$0x3f] }
  0x9c   :  { %1609 = vmatprep.mubr.f32.mxu1 %v318_v7  ;;  %1615 = vmatprep.subr.mxu1 %v101_v12  ;;  %v573_v7 = vcombine.high %v565_v1, %v565_v1  ;;  %v572_v12 = vrot.slane %v558_v8, %v4362_v5 }
  0x9d   :  { %3289 = vmatprep.mubr.f32.mxu0 %v522_v10  ;;  %3295 = vmatprep.subr.mxu0 %v149_v13  ;;  %v161_v10 = vld [vmem:[#allocation5 + $0x2b8] sm:$0x3f]  ;;  %v112_v13 = vld [vmem:[#allocation5 + $0x130] sm:$0x3f] }
  0xa2   :  { %1610 = vmatmul.mubr.f32.vlgmr.msra.gmra.mrb[0].mxu1 %v310_v3  ;;  %3290 = vmatmul.mubr.f32.vlgmr.msra.gmra.mrb[0].mxu0 %v514_v4  ;;  %v369_v3 = vcombine.high %v361_v0, %v361_v0  ;;  %v354_v4 = vcombine.high %v59_v60, %v59_v60 }
  0xa3   :  { %1616 = vmatpush1.xpose.msra.mxu1 %v100_v16  ;;  %3296 = vmatpush1.xpose.msra.mxu0 %v148_v18  ;;  %v574_v16 = vcombine.high %v572_v12, %v572_v12  ;;  %v115_v18 = vld [vmem:[#allocation5 + $0x148] sm:$0x3f] }
  0xa4   :  { %1679 = vmatprep.mubr.f32.mxu1 %v319_v17  ;;  %1685 = vmatprep.subr.mxu1 %v103_v21  ;;  %v368_v11 = vrot.slane %v354_v4, %v4362_v5  ;;  %v60_v17 = vld [vmem:[#allocation2 + $0x50] sm:$0xff] }
  0xa5   :  { %3359 = vmatprep.mubr.f32.mxu0 %v523_v19  ;;  %3365 = vmatprep.subr.mxu0 %v151_v23  ;;  %v72_v19 = vld [vmem:[#allocation2 + $0xb0] sm:$0xff]  ;;  %v378_v21 = vrot.slane %v60_v17, %v4362_v5  ;;  %v114_v23 = vld [vmem:[#allocation5 + $0x140] sm:$0x3f] }
  0xa6   :  { %v582_v22 = vrot.slane %v72_v19, %v4362_v5  ;;  %v575_v28 = vcombine.high %v72_v19, %v72_v19 }
  0xaa   :  { %1680 = vmatmul.mubr.f32.vlgmr.msra.gmra.mrb[0].mxu1 %v317_v14  ;;  %3360 = vmatmul.mubr.f32.vlgmr.msra.gmra.mrb[0].mxu0 %v521_v15  ;;  %v370_v14 = vcombine.high %v368_v11, %v368_v11  ;;  %v160_v15 = vld [vmem:[#allocation5 + $0x2b0] sm:$0x3f] }
  0xab   :  { %1686 = vmatpush1.xpose.msra.mxu1 %v102_v26  ;;  %3366 = vmatpush1.xpose.msra.mxu0 %v150_v29  ;;  %v162_v26 = vld [vmem:[#allocation5 + $0x2c0] sm:$0x3f]  ;;  %v117_v29 = vld [vmem:[#allocation5 + $0x158] sm:$0x3f] }
  0xac   :  { %1749 = vmatprep.mubr.f32.mxu1 %v335_v27  ;;  %1755 = vmatprep.subr.mxu1 %v105_v32  ;;  %v590_v27 = vcombine.high %v582_v22, %v582_v22  ;;  %v589_v32 = vrot.slane %v575_v28, %v4362_v5 }
  0xad   :  { %3429 = vmatprep.mubr.f32.mxu0 %v539_v30  ;;  %3435 = vmatprep.subr.mxu0 %v153_v33  ;;  %v165_v30 = vld [vmem:[#allocation5 + $0x2d8] sm:$0x3f]  ;;  %v116_v33 = vld [vmem:[#allocation5 + $0x150] sm:$0x3f] }
  0xb2   :  { %1750 = vmatmul.mubr.f32.vlgmr.msra.gmra.mrb[0].mxu1 %v327_v24  ;;  %3430 = vmatmul.mubr.f32.vlgmr.msra.gmra.mrb[0].mxu0 %v531_v25  ;;  %v386_v24 = vcombine.high %v378_v21, %v378_v21  ;;  %v371_v25 = vcombine.high %v60_v17, %v60_v17 }
  0xb3   :  { %1756 = vmatpush1.xpose.msra.mxu1 %v104_v36  ;;  %3436 = vmatpush1.xpose.msra.mxu0 %v152_v38  ;;  %v591_v36 = vcombine.high %v589_v32, %v589_v32  ;;  %v119_v38 = vld [vmem:[#allocation5 + $0x168] sm:$0x3f] }
  0xb4   :  { %1819 = vmatprep.mubr.f32.mxu1 %v336_v37  ;;  %1825 = vmatprep.subr.mxu1 %v107_v41  ;;  %v385_v31 = vrot.slane %v371_v25, %v4362_v5  ;;  %v61_v37 = vld [vmem:[#allocation2 + $0x58] sm:$0xff] }
  0xb5   :  { %3499 = vmatprep.mubr.f32.mxu0 %v540_v39  ;;  %3505 = vmatprep.subr.mxu0 %v155_v43  ;;  %v73_v39 = vld [vmem:[#allocation2 + $0xb8] sm:$0xff]  ;;  %v395_v41 = vrot.slane %v61_v37, %v4362_v5  ;;  %v118_v43 = vld [vmem:[#allocation5 + $0x160] sm:$0x3f] }
  0xb6   :  { %v599_v42 = vrot.slane %v73_v39, %v4362_v5  ;;  %v592_v48 = vcombine.high %v73_v39, %v73_v39 }
  0xba   :  { %1820 = vmatmul.mubr.f32.vlgmr.msra.gmra.mrb[0].mxu1 %v334_v34  ;;  %3500 = vmatmul.mubr.f32.vlgmr.msra.gmra.mrb[0].mxu0 %v538_v35  ;;  %v387_v34 = vcombine.high %v385_v31, %v385_v31  ;;  %v164_v35 = vld [vmem:[#allocation5 + $0x2d0] sm:$0x3f] }
  0xbb   :  { %1826 = vmatpush1.xpose.msra.mxu1 %v106_v46  ;;  %3506 = vmatpush1.xpose.msra.mxu0 %v154_v49  ;;  %v166_v46 = vld [vmem:[#allocation5 + $0x2e0] sm:$0x3f]  ;;  %v121_v49 = vld [vmem:[#allocation5 + $0x178] sm:$0x3f] }
  0xbc   :  { %1889 = vmatprep.mubr.f32.mxu1 %v352_v47  ;;  %1895 = vmatprep.subr.mxu1 %v109_v52  ;;  %v607_v47 = vcombine.high %v599_v42, %v599_v42  ;;  %v606_v52 = vrot.slane %v592_v48, %v4362_v5 }
  0xbd   :  { %3569 = vmatprep.mubr.f32.mxu0 %v556_v50  ;;  %3575 = vmatprep.subr.mxu0 %v157_v53  ;;  %v169_v50 = vld [vmem:[#allocation5 + $0x2f8] sm:$0x3f]  ;;  %v120_v53 = vld [vmem:[#allocation5 + $0x170] sm:$0x3f] }
  0xc2   :  { %1890 = vmatmul.mubr.f32.vlgmr.msra.gmra.mrb[0].mxu1 %v344_v44  ;;  %3570 = vmatmul.mubr.f32.vlgmr.msra.gmra.mrb[0].mxu0 %v548_v45  ;;  %v403_v44 = vcombine.high %v395_v41, %v395_v41  ;;  %v388_v45 = vcombine.high %v61_v37, %v61_v37 }
  0xc3   :  { %1896 = vmatpush1.xpose.msra.mxu1 %v108_v56  ;;  %3576 = vmatpush1.xpose.msra.mxu0 %v156_v58  ;;  %v608_v56 = vcombine.high %v606_v52, %v606_v52 }
  0xc4   :  { %1959 = vmatprep.mubr.f32.mxu1 %v353_v57  ;;  %1965 = vmatprep.subr.mxu1 %v111_v61  ;;  %v402_v51 = vrot.slane %v388_v45, %v4362_v5  ;;  %v4083_v57 = vld [vmem:[#allocation7] ss:$0 sm:$0xff] }
  0xc5   :  { %3639 = vmatprep.mubr.f32.mxu0 %v557_v59  ;;  %3645 = vmatprep.subr.mxu0 %v159_v63 }
  0xca   :  { %1960 = vmatmul.mubr.f32.vlgmr.msra.gmra.mrb[0].mxu1 %v351_v54  ;;  %3640 = vmatmul.mubr.f32.vlgmr.msra.gmra.mrb[0].mxu0 %v555_v55  ;;  %v404_v54 = vcombine.high %v402_v51, %v402_v51  ;;  %v168_v55 = vld [vmem:[#allocation5 + $0x2f0] sm:$0x3f] }
  0xcb   :  { %1966 = vmatpush1.xpose.msra.mxu1 %v110_v2  ;;  %3646 = vmatpush1.xpose.msra.mxu0 %v158_v6 }
  0xcc   :  { %2029 = vmatprep.mubr.f32.mxu1 %v369_v3  ;;  %2035 = vmatprep.subr.mxu1 %v113_v9 }
  0xcd   :  { %3709 = vmatprep.mubr.f32.mxu0 %v573_v7  ;;  %3715 = vmatprep.subr.mxu0 %v161_v10 }
  0xd2   :  { %2030 = vmatmul.mubr.f32.vlgmr.msra.gmra.mrb[0].mxu1 %v361_v0  ;;  %3710 = vmatmul.mubr.f32.vlgmr.msra.gmra.mrb[0].mxu0 %v565_v1 }
  0xd3   :  { %2036 = vmatpush1.xpose.msra.mxu1 %v112_v13  ;;  %3716 = vmatpush1.xpose.msra.mxu0 %v160_v15 }
  0xd4   :  { %2099 = vmatprep.mubr.f32.mxu1 %v370_v14  ;;  %2105 = vmatprep.subr.mxu1 %v115_v18 }
  0xd5   :  { %3779 = vmatprep.mubr.f32.mxu0 %v574_v16  ;;  %3785 = vmatprep.subr.mxu0 %v163_v20 }
  0xda   :  { %2100 = vmatmul.mubr.f32.vlgmr.msra.gmra.mrb[0].mxu1 %v368_v11  ;;  %3780 = vmatmul.mubr.f32.vlgmr.msra.gmra.mrb[0].mxu0 %v572_v12 }
  0xdb   :  { %2106 = vmatpush1.xpose.msra.mxu1 %v114_v23  ;;  %3786 = vmatpush1.xpose.msra.mxu0 %v162_v26 }
  0xdc   :  { %2169 = vmatprep.mubr.f32.mxu1 %v386_v24  ;;  %2175 = vmatprep.subr.mxu1 %v117_v29 }
  0xdd   :  { %3849 = vmatprep.mubr.f32.mxu0 %v590_v27  ;;  %3855 = vmatprep.subr.mxu0 %v165_v30 }
  0xe2   :  { %2170 = vmatmul.mubr.f32.vlgmr.msra.gmra.mrb[0].mxu1 %v378_v21  ;;  %3850 = vmatmul.mubr.f32.vlgmr.msra.gmra.mrb[0].mxu0 %v582_v22 }
  0xe3   :  { %2176 = vmatpush1.xpose.msra.mxu1 %v116_v33  ;;  %3856 = vmatpush1.xpose.msra.mxu0 %v164_v35 }
  0xe4   :  { %2239 = vmatprep.mubr.f32.mxu1 %v387_v34  ;;  %2245 = vmatprep.subr.mxu1 %v119_v38 }
  0xe5   :  { %3919 = vmatprep.mubr.f32.mxu0 %v591_v36  ;;  %3925 = vmatprep.subr.mxu0 %v167_v40 }
  0xea   :  { %2240 = vmatmul.mubr.f32.vlgmr.msra.gmra.mrb[0].mxu1 %v385_v31  ;;  %3920 = vmatmul.mubr.f32.vlgmr.msra.gmra.mrb[0].mxu0 %v589_v32 }
  0xeb   :  { %2246 = vmatpush1.xpose.msra.mxu1 %v118_v43  ;;  %3926 = vmatpush1.xpose.msra.mxu0 %v166_v46 }
  0xec   :  { %2309 = vmatprep.mubr.f32.mxu1 %v403_v44  ;;  %2315 = vmatprep.subr.mxu1 %v121_v49 }
  0xed   :  { %3989 = vmatprep.mubr.f32.mxu0 %v607_v47  ;;  %3995 = vmatprep.subr.mxu0 %v169_v50 }
  0xf2   :  { %2310 = vmatmul.mubr.f32.vlgmr.msra.gmra.mrb[0].mxu1 %v395_v41  ;;  %3990 = vmatmul.mubr.f32.vlgmr.msra.gmra.mrb[0].mxu0 %v599_v42 }
  0xf3   :  { %2316 = vmatpush1.xpose.msra.mxu1 %v120_v53  ;;  %3996 = vmatpush1.xpose.msra.mxu0 %v168_v55 }
  0xf4   :  { %2379 = vmatprep.mubr.f32.mxu1 %v404_v54  ;;  %4059 = vmatprep.mubr.f32.mxu0 %v608_v56 }
  0xfa   :  { %2380 = vmatmul.mubr.f32.vlgmr.msra.gmra.mrb[0].mxu1 %v402_v51  ;;  %4060 = vmatmul.mubr.f32.vlgmr.msra.gmra.mrb[0].mxu0 %v606_v52 }
 0x1cd   :  { %v2381_v58 = vpop.f32.mrb[0].mxu1  ;;  %v4061_v60 = vpop.f32.mrb[0].mxu0 }
 0x1ce   :  { %v4084_v59 = vadd.f32 %v4083_v57, %v2381_v58  ;;  %v2383_v5 = vpop.f32.mrb[1].mxu1  ;;  %v4063_v61 = vpop.f32.mrb[1].mxu0 }
 0x1d0   :  { %v4085_v62 = vadd.f32 %v4084_v59, %v4061_v60 }
 0x1d2   :  { %4066 = vst.msk [vmem:[#allocation8] sm:$0x3] %vm4065_vm0, %v4085_v62 }
 0x1d3   :  { %4284 = shalt.err (!%p4281_p0)
}
 0x1d4   :  { %s4285_s24 = scalar_lea.hbm %s4427_s3, 32 }
 0x1d5   :  { %p4286_p1 = scmp.ne.s32.totalorder %s4427_s3, %s4285_s24  ;;  %p4289_p2 = scmp.lt.u32.totalorder %s4285_s24, %s4427_s3 }
 0x1d7   :  { %p4291_p3 = pnand %p4289_p2, %p4286_p1 }
 0x1d9   :  { %4294 = shalt.err (!%p4291_p3)
}
 0x1da   :  { %4076 = dma.vmem_to_hbm [thread:$0]  %s4074_s20, 32, %s4427_s3, [#allocation4]  }
 0x1db   :  { %4299 = dma.done.wait [#allocation4], 32  }
 0x1dc   :  { %4300 = vsyncadd [#allocation4], 4294967264 }
 0x1dd   :  { %4080 = vsyncpa [#allocation3], 1 }
 0x1de   :  { %4081 = vsyncpa [#allocation6], 1 }
 0x1df   :  { %4082 = vsyncpa [#allocation4], 1 }

</bundles_post_ra>
